<compile_context>
chip_gen: v7x
topology: tpu7x:2x2x1
jax: 0.10.0
libtpu: 0.0.40
codegen_flags: <defaults>
</compile_context>

<pallas_src>
import jax
import jax.numpy as jnp
from jax.experimental import pallas as pl
from jax.experimental.pallas import tpu as pltpu


def darknet_block_kernel(x_ref, w1_ref, b1_ref, w2_ref, b2_ref, o_ref):
    # x_ref : (1, C, T)   channels on sublanes, lane-dense spatial tile
    # w1_ref: (Ch, C)  mxu dtype     b1_ref: (Ch, 1) f32   (BN1 + bias folded)
    # w2_ref: (C, Ch)  mxu dtype     b2_ref: (C, 1)  f32   (BN2 + bias folded)
    x = x_ref[0]                                                    # (C, T)

    # conv1x1 (+ folded BN1) -> SiLU.  MXU in w1's dtype, f32 accumulation.
    h = jnp.dot(w1_ref[...], x.astype(w1_ref.dtype),
                preferred_element_type=jnp.float32)
    h = h + b1_ref[...]
    h = h * jax.nn.sigmoid(h)                                       # (Ch, T) f32

    # conv1x1 (+ folded BN2) -> SiLU.  h cast to the MXU operand dtype.
    y = jnp.dot(w2_ref[...], h.astype(w2_ref.dtype),
                preferred_element_type=jnp.float32)
    y = y + b2_ref[...]
    y = y * jax.nn.sigmoid(y)                                       # (C, T) f32

    # Residual add: re-read x from VMEM here so the (C, T) tile is not kept
    # live across both matmuls (shorter live range -> fewer spills).  The
    # re-read is a VMEM vld, no extra HBM traffic.
    o_ref[0] = (x_ref[0].astype(jnp.float32) + y).astype(o_ref.dtype)


def _tile_vmem_bytes(t, c, ch, x_itemsize, w_itemsize):
    """Explicit per-grid-step VMEM estimate for spatial tile size t."""
    xio = 2 * 2 * c * t * x_itemsize                      # x-in + out, double-buffered
    wts = 2 * (2 * c * ch * w_itemsize + (c + ch) * 4)    # weights + biases (dbl-buf, conservative)
    mid = 4 * (c + ch) * t                                # f32 intermediates h, y
    return xio + wts + mid


def _pick_spatial_tile(hw_pad, n_batch, c, ch, x_itemsize, w_itemsize,
                       budget, max_tile):
    """Largest multiple of 128 dividing hw_pad that fits the VMEM budget and,
    if possible, still leaves >= 2 grid steps (v7x megacore)."""
    cands = [128 * k for k in range(min(max_tile, hw_pad) // 128, 0, -1)
             if hw_pad % (128 * k) == 0]
    if not cands:                                          # defensive; hw_pad is a 128-multiple
        cands = [hw_pad]
    fits = [t for t in cands if _tile_vmem_bytes(t, c, ch, x_itemsize, w_itemsize) <= budget]
    pool = fits if fits else [cands[-1]]
    for t in pool:                                         # pool is descending in size
        if n_batch * (hw_pad // t) >= 2:
            return t
    return pool[0]


def darknet_block(x_nchw, params, *, eps=1e-5, max_tile=8192, mxu_dtype=None):
    """x_nchw: (N, C, H, W).  Returns (N, C, H, W).  Eval-mode BatchNorm."""
    N, C, H, W = x_nchw.shape
    Ch = C // 2
    HW = H * W
    HW_pad = 128 * pl.cdiv(HW, 128)          # lane-dense tiles need a 128-multiple

    # MXU operand dtype: match low-precision activations so both matmuls hit
    # the fast bf16 MXU path; keep f32 for f32 activations unless overridden.
    if mxu_dtype is None:
        mxu_dtype = x_nchw.dtype if jnp.dtype(x_nchw.dtype).itemsize < 4 else jnp.float32
    mxu_dtype = jnp.dtype(mxu_dtype)

    # (N, C, H, W) -> (N, C, H*W): free reshape; pad spatial to 128-multiple.
    x3d = x_nchw.reshape(N, C, HW)
    if HW_pad != HW:
        x3d = jnp.pad(x3d, ((0, 0), (0, 0), (0, HW_pad - HW)))

    # Fold eval-mode BatchNorm + conv bias into the conv weights (host, f32),
    # then cast the weights to the MXU operand dtype; biases stay f32.
    f32 = jnp.float32
    w1 = params["w1"].reshape(Ch, C).astype(f32)
    w2 = params["w2"].reshape(C, Ch).astype(f32)
    s1 = params["g1"].astype(f32) * jax.lax.rsqrt(params["v1"].astype(f32) + eps)
    s2 = params["g2"].astype(f32) * jax.lax.rsqrt(params["v2"].astype(f32) + eps)
    w1f = (w1 * s1[:, None]).astype(mxu_dtype)
    w2f = (w2 * s2[:, None]).astype(mxu_dtype)
    b1f = ((params["b1"].astype(f32) - params["m1"].astype(f32)) * s1
           + params["be1"].astype(f32)).reshape(Ch, 1)
    b2f = ((params["b2"].astype(f32) - params["m2"].astype(f32)) * s2
           + params["be2"].astype(f32)).reshape(C, 1)

    # VMEM-aware tile selection from this chip's actual VMEM capacity.
    try:
        vmem_cap = int(pltpu.get_tpu_info().vmem_capacity_bytes)
    except Exception:
        vmem_cap = 128 << 20
    budget = vmem_cap // 2
    x_itemsize = jnp.dtype(x3d.dtype).itemsize
    T = _pick_spatial_tile(HW_pad, N, C, Ch, x_itemsize, mxu_dtype.itemsize,
                           budget, max_tile)
    grid = (N, HW_pad // T)
    est = _tile_vmem_bytes(T, C, Ch, x_itemsize, mxu_dtype.itemsize)
    vmem_limit = int(min(int(vmem_cap * 0.75), max(2 * est, 32 << 20)))

    out3d = pl.pallas_call(
        darknet_block_kernel,
        out_shape=jax.ShapeDtypeStruct((N, C, HW_pad), x3d.dtype),
        grid_spec=pltpu.PrefetchScalarGridSpec(
            num_scalar_prefetch=0,
            grid=grid,
            in_specs=[
                pl.BlockSpec((1, C, T), lambda n, s: (n, 0, s)),   # x tile
                pl.BlockSpec((Ch, C), lambda n, s: (0, 0)),        # folded w1 (resident)
                pl.BlockSpec((Ch, 1), lambda n, s: (0, 0)),        # folded b1
                pl.BlockSpec((C, Ch), lambda n, s: (0, 0)),        # folded w2 (resident)
                pl.BlockSpec((C, 1), lambda n, s: (0, 0)),         # folded b2
            ],
            out_specs=pl.BlockSpec((1, C, T), lambda n, s: (n, 0, s)),
        ),
        compiler_params=pltpu.CompilerParams(
            dimension_semantics=("parallel", "parallel"),
            vmem_limit_bytes=vmem_limit),
    )(x3d, w1f, b1f, w2f, b2f)

    if HW_pad != HW:
        out3d = out3d[:, :, :HW]
    return out3d.reshape(N, C, H, W)


def reference(x_nchw, params, *, eps=1e-5):
    """Pure-JAX reference mirroring the PyTorch forward (eval-mode BN)."""
    N, C, H, W = x_nchw.shape
    Ch = C // 2
    x3 = x_nchw.astype(jnp.float32).reshape(N, C, H * W)
    w1 = params["w1"].reshape(Ch, C)
    w2 = params["w2"].reshape(C, Ch)

    def bn(z, g, be, m, v):
        return ((z - m[None, :, None]) / jnp.sqrt(v + eps)[None, :, None]
                * g[None, :, None] + be[None, :, None])

    h = jnp.einsum("oc,ncs->nos", w1, x3) + params["b1"][None, :, None]
    h = bn(h, params["g1"], params["be1"], params["m1"], params["v1"])
    h = h * jax.nn.sigmoid(h)
    y = jnp.einsum("oc,ncs->nos", w2, h) + params["b2"][None, :, None]
    y = bn(y, params["g2"], params["be2"], params["m2"], params["v2"])
    y = y * jax.nn.sigmoid(y)
    return (x3 + y).reshape(N, C, H, W)


def make_params(key, C):
    Ch = C // 2
    ks = jax.random.split(key, 6)
    return {
        # conv1: (Ch, C, 1, 1), conv2: (C, Ch, 1, 1)
        "w1": 0.3 * jax.random.normal(ks[0], (Ch, C, 1, 1), jnp.float32),
        "b1": 0.1 * jax.random.normal(ks[1], (Ch,), jnp.float32),
        "w2": 0.3 * jax.random.normal(ks[2], (C, Ch, 1, 1), jnp.float32),
        "b2": 0.1 * jax.random.normal(ks[3], (C,), jnp.float32),
        # BatchNorm eval-mode parameters (deterministic, nontrivial)
        "g1": 1.0 + 0.1 * jax.random.normal(ks[4], (Ch,), jnp.float32),
        "be1": 0.05 * jnp.arange(Ch, dtype=jnp.float32),
        "m1": 0.02 * jnp.arange(Ch, dtype=jnp.float32),
        "v1": 1.0 + 0.01 * jnp.arange(Ch, dtype=jnp.float32),
        "g2": 1.0 + 0.1 * jax.random.normal(ks[5], (C,), jnp.float32),
        "be2": -0.05 * jnp.arange(C, dtype=jnp.float32),
        "m2": 0.01 * jnp.arange(C, dtype=jnp.float32),
        "v2": 1.0 + 0.02 * jnp.arange(C, dtype=jnp.float32),
    }
    # TODO(synk): training-mode BatchNorm (batch statistics over N*H*W) would
    # need an extra cross-tile reduction pass; eval-mode running stats are
    # folded into the conv weights here, matching module.eval() semantics.


if __name__ == "__main__":
    N, C, H, W = 2, 8, 16, 16          # in_channels = 8, hidden = 4, H*W = 256
    key = jax.random.PRNGKey(0)
    kx, kp = jax.random.split(key)
    x = jax.random.normal(kx, (N, C, H, W), jnp.float32)
    params = make_params(kp, C)

    # f32 activations -> f32 MXU operands (tight tolerance vs f32 reference).
    out = jax.block_until_ready(darknet_block(x, params))
    ref = reference(x, params)
    assert out.shape == (N, C, H, W)
    assert jnp.allclose(out, ref, atol=1e-4, rtol=1e-4), "f32 mismatch vs reference"

    # bf16 activations -> bf16 MXU operands with f32 accumulation (loose check).
    x_bf = x.astype(jnp.bfloat16)
    out_bf = jax.block_until_ready(darknet_block(x_bf, params))
    ref_bf = reference(x_bf, params)
    assert out_bf.dtype == jnp.bfloat16
    max_err = jnp.max(jnp.abs(out_bf.astype(jnp.float32) - ref_bf))
    assert float(max_err) < 0.25, "bf16 mismatch vs reference"

    print("KERNEL_OK")
</pallas_src>

<mosaic_0001>
module attributes {stable_mosaic.version = 11 : i64} {
  func.func @darknet_block_kernel(%arg0: i32, %arg1: i32, %arg2: memref<1x8x256xf32, #tpu.memory_space<vmem>>, %arg3: memref<4x8xf32, #tpu.memory_space<vmem>>, %arg4: memref<4x1xf32, #tpu.memory_space<vmem>>, %arg5: memref<8x4xf32, #tpu.memory_space<vmem>>, %arg6: memref<8x1xf32, #tpu.memory_space<vmem>>, %arg7: memref<1x8x256xf32, #tpu.memory_space<vmem>>) attributes {dimension_semantics = [#tpu.dimension_semantics<parallel>, #tpu.dimension_semantics<parallel>], iteration_bounds = array<i64: 2, 1>, scalar_prefetch = 0 : i64, scratch_operands = 0 : i64, tpu.core_type = #tpu.core_type<tc>, window_params = [{transform_indices = @transform_0, window_bounds = array<i64: 1, 8, 256>}, {pipeline_mode = #tpu.pipeline_mode<synchronous>, transform_indices = @transform_1, window_bounds = array<i64: 4, 8>}, {pipeline_mode = #tpu.pipeline_mode<synchronous>, transform_indices = @transform_2, window_bounds = array<i64: 4, 1>}, {pipeline_mode = #tpu.pipeline_mode<synchronous>, transform_indices = @transform_3, window_bounds = array<i64: 8, 4>}, {pipeline_mode = #tpu.pipeline_mode<synchronous>, transform_indices = @transform_4, window_bounds = array<i64: 8, 1>}, {transform_indices = @transform_5, window_bounds = array<i64: 1, 8, 256>}]} {
    %c0 = arith.constant 0 : index
    %c0_0 = arith.constant 0 : index
    %c0_1 = arith.constant 0 : index
    %0 = vector.load %arg2[%c0, %c0_0, %c0_1] : memref<1x8x256xf32, #tpu.memory_space<vmem>>, vector<1x8x256xf32>
    %1 = vector.shape_cast %0 : vector<1x8x256xf32> to vector<8x256xf32>
    %c0_2 = arith.constant 0 : index
    %c0_3 = arith.constant 0 : index
    %2 = vector.load %arg3[%c0_2, %c0_3] : memref<4x8xf32, #tpu.memory_space<vmem>>, vector<4x8xf32>
    %cst = arith.constant dense<0.000000e+00> : vector<4x256xf32>
    %3 = tpu.matmul %2, %1, %cst {dimension_numbers = #tpu.dot_dimension_numbers<[1], [0], [0], [1], [0, 0, 1, 1], [], []>} : vector<4x8xf32>, vector<8x256xf32>, vector<4x256xf32> -> vector<4x256xf32>
    %c0_4 = arith.constant 0 : index
    %c0_5 = arith.constant 0 : index
    %4 = vector.load %arg4[%c0_4, %c0_5] : memref<4x1xf32, #tpu.memory_space<vmem>>, vector<4x1xf32>
    %5 = vector.broadcast %4 : vector<4x1xf32> to vector<4x256xf32>
    %6 = arith.addf %3, %5 : vector<4x256xf32>
    %7 = arith.negf %6 : vector<4x256xf32>
    %8 = math.exp %7 : vector<4x256xf32>
    %cst_6 = arith.constant 1.000000e+00 : f32
    %9 = vector.broadcast %cst_6 : f32 to vector<4x256xf32>
    %10 = arith.addf %9, %8 : vector<4x256xf32>
    %11 = arith.divf %9, %10 : vector<4x256xf32>
    %12 = arith.mulf %6, %11 : vector<4x256xf32>
    %c0_7 = arith.constant 0 : index
    %c0_8 = arith.constant 0 : index
    %13 = vector.load %arg5[%c0_7, %c0_8] : memref<8x4xf32, #tpu.memory_space<vmem>>, vector<8x4xf32>
    %cst_9 = arith.constant dense<0.000000e+00> : vector<8x256xf32>
    %14 = tpu.matmul %13, %12, %cst_9 {dimension_numbers = #tpu.dot_dimension_numbers<[1], [0], [0], [1], [0, 0, 1, 1], [], []>} : vector<8x4xf32>, vector<4x256xf32>, vector<8x256xf32> -> vector<8x256xf32>
    %c0_10 = arith.constant 0 : index
    %c0_11 = arith.constant 0 : index
    %15 = vector.load %arg6[%c0_10, %c0_11] : memref<8x1xf32, #tpu.memory_space<vmem>>, vector<8x1xf32>
    %16 = vector.broadcast %15 : vector<8x1xf32> to vector<8x256xf32>
    %17 = arith.addf %14, %16 : vector<8x256xf32>
    %18 = arith.negf %17 : vector<8x256xf32>
    %19 = math.exp %18 : vector<8x256xf32>
    %cst_12 = arith.constant 1.000000e+00 : f32
    %20 = vector.broadcast %cst_12 : f32 to vector<8x256xf32>
    %21 = arith.addf %20, %19 : vector<8x256xf32>
    %22 = arith.divf %20, %21 : vector<8x256xf32>
    %23 = arith.mulf %17, %22 : vector<8x256xf32>
    %c0_13 = arith.constant 0 : index
    %c0_14 = arith.constant 0 : index
    %c0_15 = arith.constant 0 : index
    %24 = vector.load %arg2[%c0_13, %c0_14, %c0_15] : memref<1x8x256xf32, #tpu.memory_space<vmem>>, vector<1x8x256xf32>
    %25 = vector.shape_cast %24 : vector<1x8x256xf32> to vector<8x256xf32>
    %26 = arith.addf %25, %23 : vector<8x256xf32>
    %c0_16 = arith.constant 0 : index
    %c0_17 = arith.constant 0 : index
    %c0_18 = arith.constant 0 : index
    %27 = vector.load %arg7[%c0_16, %c0_17, %c0_18] : memref<1x8x256xf32, #tpu.memory_space<vmem>>, vector<1x8x256xf32>
    %28 = vector.shape_cast %27 : vector<1x8x256xf32> to vector<8x256xf32>
    %29 = vector.shape_cast %26 : vector<8x256xf32> to vector<1x8x256xf32>
    tpu.vector_store %arg7[%c0_16, %c0_17, %c0_18], %29 {strides = array<i32>} : memref<1x8x256xf32, #tpu.memory_space<vmem>>, vector<1x8x256xf32>,
    return
  }
  func.func @transform_0(%arg0: i32, %arg1: i32) -> (i32, i32, i32) {
    %c0_i32 = arith.constant 0 : i32
    %c0_i32_0 = arith.constant 0 : i32
    return %arg0, %c0_i32, %arg1 : i32, i32, i32
  }
  func.func @transform_1(%arg0: i32, %arg1: i32) -> (i32, i32) {
    %c0_i32 = arith.constant 0 : i32
    %c0_i32_0 = arith.constant 0 : i32
    %c0_i32_1 = arith.constant 0 : i32
    return %c0_i32, %c0_i32_0 : i32, i32
  }
  func.func @transform_2(%arg0: i32, %arg1: i32) -> (i32, i32) {
    %c0_i32 = arith.constant 0 : i32
    %c0_i32_0 = arith.constant 0 : i32
    %c0_i32_1 = arith.constant 0 : i32
    return %c0_i32, %c0_i32_0 : i32, i32
  }
  func.func @transform_3(%arg0: i32, %arg1: i32) -> (i32, i32) {
    %c0_i32 = arith.constant 0 : i32
    %c0_i32_0 = arith.constant 0 : i32
    %c0_i32_1 = arith.constant 0 : i32
    return %c0_i32, %c0_i32_0 : i32, i32
  }
  func.func @transform_4(%arg0: i32, %arg1: i32) -> (i32, i32) {
    %c0_i32 = arith.constant 0 : i32
    %c0_i32_0 = arith.constant 0 : i32
    %c0_i32_1 = arith.constant 0 : i32
    return %c0_i32, %c0_i32_0 : i32, i32
  }
  func.func @transform_5(%arg0: i32, %arg1: i32) -> (i32, i32, i32) {
    %c0_i32 = arith.constant 0 : i32
    %c0_i32_0 = arith.constant 0 : i32
    return %arg0, %c0_i32, %arg1 : i32, i32, i32
  }
}

</mosaic_0001>

<bundles_post_ra>
// kernel: tpu_custom_call.1
= control target key start
LH: loop header
LB: loop body
LE: loop exit
PB: predicated region body
PF: predicated region fallthrough
CT: control target
= control target key end

     0   :  { %10 = vsyncpa [#allocation3], 0  ;;  %s1009_s0 = inlined_call_operand.hbm [shape: f32[2,8,256], index: 0, kind: input, shape index: {}]   ;;  %s1010_s1 = inlined_call_operand.vmem [shape: f32[4,8], index: 1, kind: input, shape index: {}]   ;;  %s1011_s2 = inlined_call_operand.vmem [shape: f32[4,1], index: 2, kind: input, shape index: {}]   ;;  %s1012_s3 = inlined_call_operand.vmem [shape: f32[8,4], index: 3, kind: input, shape index: {}]   ;;  %s1013_s4 = inlined_call_operand.vmem [shape: f32[8,1], index: 4, kind: input, shape index: {}]   ;;  %s1014_s5 = inlined_call_operand.hbm [shape: f32[2,8,256], index: 5, kind: output, shape index: {}]  }
   0x1   :  { %12 = vsyncpa [#allocation3 + $0x1], 0 }
   0x2   :  { %13 = vsyncpa [#allocation4], 0 }
   0x3   :  { %15 = vsyncpa [#allocation4 + $0x1], 0  ;;  %s821_s18 = smov 0   ;;  %s823_s19 = smov 0  }
   0x4   :  { %s825_s20 = smov 0   ;;  %s827_s21 = smov 0  }
   0x5   :  { %s829_s22 = smov 0   ;;  %s831_s23 = smov 0  }
   0x6 LB: > { %s567_s24 = sadd.s32 4294967295, %s785_s23   ;;  %s568_s25 = sadd.s32 4294967294, %s785_s23   ;;  %s785_s23 = sphi %s831_s23, %s21_s23   ;;  %s781_s22 = sphi %s829_s22, %s1030_s22   ;;  %s777_s21 = sphi %s827_s21, %s1029_s21   ;;  %s773_s20 = sphi %s825_s20, %s1028_s20   ;;  %s769_s19 = sphi %s823_s19, %s1027_s19   ;;  %s765_s18 = sphi %s821_s18, %s1026_s18  }
   0x7   : > { %s33_s26 = sadd.s32 1, %s781_s22  ;;  %s42_s27 = sadd.s32 1, %s773_s20 }
   0x8   : > { %p35_p0 = scmp.ge.s32.totalorder %s33_s26, 2  ;;  %p49_p1 = scmp.ne.s32.totalorder %s773_s20, %s769_s19 }
   0x9   : > { %p50_p2 = scmp.eq.s32.totalorder %s785_s23, 0  ;;  %p55_p3 = scmp.ne.s32.totalorder %s769_s19, %s765_s18 }
   0xa   : > { %s1032_s26 = smov (%p35_p0, %s33_s26), 0  ;;  %p56_p5 = scmp.eq.s32.totalorder %s567_s24, 0 }
   0xb   : > { %p862_p4 = por %p50_p2, %p49_p1  ;;  %s37_s29 = ssub.s32 %s781_s22, %s1032_s26 }
   0xc   : > { %p165_p6 = scmp.eq.s32.totalorder %s567_s24, 1  ;;  %p40_p7 = scmp.eq.s32.totalorder %s37_s29, 0 }
   0xd   : > { %p868_p8 = por %p56_p5, %p55_p3  ;;  %p171_p10 = scmp.eq.s32.totalorder %s568_s25, 1 }
   0xe   : > { %p872_p9 = por %p165_p6, %p49_p1  ;;  %p604_p13 = scmp.lt.s32.totalorder %s785_s23, 2 }
   0xf   : > { %s877_s7 = scalar_select %p40_p7, %s773_s20, %s42_s27  }
  0x10   : > { %s1018_s6 = scalar_select %p872_p9, 1, 0 }
  0x11   : > { %p879_p11 = por %p171_p10, %p55_p3  ;;  %s203_s9 = sand.u32 1, %s773_s20  }
  0x12   : > { %s571_s10 = sshll.u32 %s203_s9, 4  ;;  %s590_s11 = sshll.u32 %s781_s22, 8 }
  0x13   : > { %s1019_s8 = scalar_select %p879_p11, 1, 0 }
  0x14   : > { %s890_s14 = scalar_lea.hbm %s1009_s0, %s590_s11  ;;  %s207_s15 = scalar_lea.vmem [#allocation2], %s571_s10 }
  0x15   : > { %s217_s16 = sshll.u32 %s207_s15, 4  ;;  %p896_p0 = pnand %p604_p13, %p862_p4  ;;  %s892_s16 = int_to_ptr.vmem [resolvable:$true] %s217_s16 }
  0x16   : > { %s204_s24 = scalar_lea.sflag [#allocation3], %s203_s9  ;;  %s673_s25 = scalar_lea.hbm %s890_s14, 256 }
  0x17   : > { %p674_p3 = scmp.ne.s32.totalorder %s890_s14, %s673_s25  ;;  %p675_p5 = pneg %p896_p0 }
  0x18   : > { %s678_s28 = scalar_lea.hbm %s1009_s0, 512  ;;  %p679_p4 = scmp.lt.u32.totalorder %s890_s14, %s1009_s0 }
  0x19   : > { %p676_p6 = pnand %p675_p5, %p674_p3  ;;  %p680_p10 = scmp.lt.u32.totalorder %s678_s28, %s673_s25 }
  0x1a   : > { %p682_p12 = scmp.lt.u32.totalorder %s673_s25, %s890_s14 }
  0x1b   : > { %p677_p7 = pneg %p676_p6  ;;  %p681_p13 = por %p680_p10, %p679_p4 }
  0x1d   : > { %p683_p1 = por %p682_p12, %p681_p13 }
  0x1f   : > { %p684_p2 = pnand %p683_p1, %p677_p7 }
  0x21   : > { %687 = shalt.err (!%p684_p2)
}
  0x22   : > { %s688_s9 = scalar_lea.vmem %s892_s16, 256  ;;  %s787_s12 = smov [#allocation2]  }
  0x23   : > { %p689_p3 = scmp.ne.s32.totalorder %s892_s16, %s688_s9  ;;  %s693_s13 = sshll.u32 %s787_s12, 4  ;;  %s694_s13 = int_to_ptr.vmem [resolvable:$false] %s693_s13 }
  0x24   : > { %s695_s15 = scalar_lea.vmem %s694_s13, 512  ;;  %p696_p9 = scmp.lt.s32.totalorder %s892_s16, %s694_s13 }
  0x25   : > { %p691_p6 = pnand %p689_p3, %p675_p5  ;;  %p697_p4 = scmp.lt.s32.totalorder %s695_s15, %s688_s9 }
  0x27   : > { %p692_p11 = pneg %p691_p6  ;;  %p698_p10 = por %p697_p4, %p696_p9 }
  0x29   : > { %p699_p12 = pnand %p698_p10, %p692_p11 }
  0x2b   : > { %702 = shalt.err (!%p699_p12)
}
  0x2c   : > { %599 = dma.hbm_to_vmem [thread:$0]  (!%p896_p0), %s890_s14, 256, %s892_s16, %s204_s24  }
  0x2d   : > { %p1021_p1 = scmp.lt.s32.totalorder %s785_s23, 3  ;;  %p1022_p2 = scmp.ge.s32.totalorder %s785_s23, 1 }
  0x2f   : > { %p223_p5 = pnand %p1022_p2, %p1021_p1 }
  0x30   : > { %s932_s25 = sand.u32 (!%p223_p5), 1, %s769_s19  }
  0x31   : > { %226 = sbr.rel (%p223_p5) target bundleno = 565 (0x235), region = 40  ;;  %s575_s27 = sshll.u32 (!%p223_p5), %s932_s25, 4 }
  0x32   : > { %s229_s29 = scalar_lea.sflag (!%p223_p5), [#allocation3], %s932_s25  ;;  %s232_s17 = scalar_lea.vmem (!%p223_p5), [#allocation2], %s575_s27 }
  0x38   : > { %756 = dma.done.wait (%p868_p8), %s229_s29, 256  }
  0x39   : > { %758 = vsyncadd (%p868_p8), %s229_s29, 4294967040  ;;  %v788_v0 = vmov 0.0   ;;  %v789_v1 = vmov 0   ;;  %v262_v2 = vld [vmem:[%s232_s17 + $0x8] sm:$0xff]  ;;  %v261_v3 = vld [vmem:[%s232_s17] sm:$0xff]  ;;  %vm270_vm0 = vcmask 64512  }
  0x3a   : > { %338 = vmatprep.mubr.f32.mxu0 %v788_v0  ;;  %656 = vset.pattern.permute.xlu0 %v789_v1  ;;  %v263_v4 = vld [vmem:[%s1010_s1] sm:$0xf]  ;;  %vm370_vm1 = vcmask 1043456   ;;  %vm366_vm2 = vcmask 31744   ;;  %s591_s12 = sshll.u32 %s777_s21, 8  ;;  %s258_s13 = scalar_lea.vmem [#allocation5], %s575_s27 }
  0x3b   : > { %441 = vmatprep.mubr.f32.mxu1 %v788_v0  ;;  %274 = vmatprep.subr.mxu0 %v262_v2  ;;  %v264_v5 = vld [vmem:[%s1011_s2] sm:$0xf]  ;;  %s483_s15 = sshll.u32 %s258_s13, 4  ;;  %s960_s14 = scalar_lea.hbm %s1014_s5, %s591_s12  ;;  %s962_s15 = int_to_ptr.vmem [resolvable:$true] %s483_s15 }
  0x3c   : > { %275 = vmatpush1.msra.mxu0 %v261_v3  ;;  %267 = vperm.xlu0 %656, %v264_v5   ;;  %v360_v6 = vld [vmem:[%s1013_s4] sm:$0xff]  ;;  %s467_s16 = scalar_lea.sflag [#allocation4], %s932_s25  ;;  %s703_s21 = scalar_lea.vmem %s962_s15, 256 }
  0x3d   : > { %577 = vmatmul.mubr.msk.f32.vlgmr.msra.gmra.mrb[0].mxu0 %vm270_vm0, %v263_v4  ;;  %v359_v22 = vld [vmem:[%s1012_s3] sm:$0xff]  ;;  %p704_p8 = scmp.ne.s32.totalorder %s962_s15, %s703_s21  ;;  %p1023_p9 = scmp.ne.s32.totalorder %s1018_s6, 0 }
  0x3e   : > { %s790_s27 = smov [#allocation5]  }
  0x3f   : > { %p705_p11 = pnand %p704_p8, %p1023_p9  ;;  %s707_s24 = sshll.u32 %s790_s27, 4  ;;  %s708_s24 = int_to_ptr.vmem [resolvable:$false] %s707_s24 }
  0x40   : > { %363 = vperm.xlu0 %656, %v360_v6   ;;  %s709_s28 = scalar_lea.vmem %s708_s24, 512  ;;  %p710_p7 = scmp.lt.s32.totalorder %s962_s15, %s708_s24 }
  0x41   : > { %p706_p0 = pneg %p705_p11  ;;  %p711_p13 = scmp.lt.s32.totalorder %s709_s28, %s703_s21 }
  0x43   : > { %p712_p3 = por %p711_p13, %p710_p7 }
  0x45   : > { %p713_p6 = pnand %p712_p3, %p706_p0 }
  0xbb   : > { %v268_v7 = vpop.permute.xlu0 %267 }
  0xbf   : > { %v364_v23 = vpop.permute.xlu0 %363 }
 0x110   : > { %v340_v8 = vpop.f32.mrb[0].mxu0 }
 0x111   : > { %v341_v9 = vadd.f32 %v340_v8, %v268_v7  ;;  %v342_v10 = vpop.f32.mrb[1].mxu0 }
 0x112   : > { %v343_v11 = vadd.f32 %v342_v10, %v268_v7 }
 0x113   : > { %v578_v12 = vmul.f32 -1.442695, %v341_v9 }
 0x114   : > { %v579_v13 = vmul.f32 -1.442695, %v343_v11 }
 0x115   : > { %657 = vpow2.f32 %v578_v12 }
 0x116   : > { %659 = vpow2.f32 %v579_v13 }
 0x11f   : > { %v658_v14 = vpop.eup %657 }
 0x120   : > { %v660_v15 = vpop.eup %659  ;;  %v351_v16 = vadd.f32 1.0, %v658_v14 }
 0x121   : > { %v352_v17 = vadd.f32 1.0, %v660_v15 }
 0x122   : > { %661 = vrcp.f32 %v351_v16 }
 0x123   : > { %663 = vrcp.f32 %v352_v17 }
 0x12c   : > { %v662_v18 = vpop.eup %661 }
 0x12d   : > { %v664_v19 = vpop.eup %663  ;;  %v357_v21 = vmul.f32 %v662_v18, %v341_v9 }
 0x12e   : > { %v358_v20 = vmul.f32 %v664_v19, %v343_v11 }
 0x130   : > { %580 = vmatprep.subr.msk.mxu1 %vm370_vm1, %v358_v20 }
 0x131   : > { %581 = vmatpush1.msk.msra.mxu1 %vm370_vm1, %v357_v21 }
 0x132   : > { %582 = vmatmul.mubr.msk.f32.vlgmr.msra.gmra.mrb[0].mxu1 %vm366_vm2, %v359_v22 }
 0x205   : > { %v443_v24 = vpop.f32.mrb[0].mxu1 }
 0x206   : > { %v444_v25 = vadd.f32 %v443_v24, %v364_v23  ;;  %v445_v26 = vpop.f32.mrb[1].mxu1 }
 0x207   : > { %v446_v27 = vadd.f32 %v445_v26, %v364_v23 }
 0x208   : > { %v583_v28 = vmul.f32 -1.442695, %v444_v25 }
 0x209   : > { %v584_v29 = vmul.f32 -1.442695, %v446_v27 }
 0x20a   : > { %665 = vpow2.f32 %v583_v28 }
 0x20b   : > { %667 = vpow2.f32 %v584_v29 }
 0x214   : > { %v666_v30 = vpop.eup %665 }
 0x215   : > { %v668_v31 = vpop.eup %667  ;;  %v454_v32 = vadd.f32 1.0, %v666_v30 }
 0x216   : > { %v455_v33 = vadd.f32 1.0, %v668_v31 }
 0x217   : > { %669 = vrcp.f32 %v454_v32 }
 0x218   : > { %671 = vrcp.f32 %v455_v33 }
 0x221   : > { %v670_v34 = vpop.eup %669 }
 0x222   : > { %v672_v35 = vpop.eup %671  ;;  %v460_v36 = vmul.f32 %v670_v34, %v444_v25 }
 0x223   : > { %v461_v37 = vmul.f32 %v672_v35, %v446_v27 }
 0x224   : > { %v462_v38 = vadd.f32 %v460_v36, %v261_v3 }
 0x225   : > { %v463_v39 = vadd.f32 %v461_v37, %v262_v2 }
 0x226   : > { %464 = vst [vmem:[%s258_s13] sm:$0xff] %v462_v38 }
 0x227   : > { %465 = vst [vmem:[%s258_s13 + $0x8] sm:$0xff] %v463_v39 }
 0x228   : > { %716 = shalt.err (!%p713_p6)
}
 0x229   : > { %s717_s25 = scalar_lea.hbm %s960_s14, 256  ;;  %s721_s11 = scalar_lea.hbm %s1014_s5, 512 }
 0x22a   : > { %p718_p4 = scmp.ne.s32.totalorder %s960_s14, %s717_s25  ;;  %p722_p1 = scmp.lt.u32.totalorder %s960_s14, %s1014_s5 }
 0x22b   : > { %p723_p2 = scmp.lt.u32.totalorder %s721_s11, %s717_s25  ;;  %p725_p8 = scmp.lt.u32.totalorder %s717_s25, %s960_s14 }
 0x22c   : > { %p719_p10 = pnand %p718_p4, %p1023_p9 }
 0x22d   : > { %p724_p5 = por %p723_p2, %p722_p1 }
 0x22e   : > { %p720_p12 = pneg %p719_p10 }
 0x22f   : > { %p726_p11 = por %p725_p8, %p724_p5 }
 0x231   : > { %p727_p0 = pnand %p726_p11, %p720_p12 }
 0x233   : > { %730 = shalt.err (!%p727_p0)
}
 0x234   : > { %594 = dma.vmem_to_hbm [thread:$0]  (%p1023_p9), %s962_s15, 256, %s960_s14, %s467_s16  }
 0x235 PF: > { %s495_s13 = sand.u32 1, %s765_s18   ;;  %p1024_p7 = scmp.ne.s32.totalorder %s1019_s8, 0 }
 0x236   : > { %p1025_p13 = scmp.ge.s32.totalorder %s785_s23, 2  ;;  %s496_s29 = scalar_lea.sflag [#allocation4], %s495_s13 }
 0x238   : > { %p601_p3 = pnand %p1025_p13, %p1024_p7 }
 0x23a   : > { %760 = dma.done.wait (!%p601_p3), %s496_s29, 256  }
 0x23b   : > { %762 = vsyncadd (!%p601_p3), %s496_s29, 4294967040  ;;  %s21_s23 = sadd.s32 1, %s785_s23   ;;  %s1026_s18 = smov %s769_s19 }
 0x23c   : > { %p18_p6 = scmp.ge.s32.totalorder %s21_s23, 4   ;;  %s1027_s19 = smov %s773_s20 }
 0x23d   : > { %s1028_s20 = smov %s877_s7  ;;  %s1029_s21 = smov %s781_s22 }
 0x23e   : > { %s1030_s22 = smov %s1032_s26  ;;  %20 = sbr.rel (!%p18_p6) target bundleno = 6 (0x6), region = 85 }
 0x245   :  { %501 = vsyncpa [#allocation3], 1 }
 0x246   :  { %503 = vsyncpa [#allocation3 + $0x1], 1 }
 0x247   :  { %504 = vsyncpa [#allocation4], 1 }
 0x248   :  { %506 = vsyncpa [#allocation4 + $0x1], 1 }

</bundles_post_ra>
